<compile_context>
chip_gen: v7x
topology: tpu7x:2x2x1
jax: 0.10.0
libtpu: 0.0.40
codegen_flags: <defaults>
</compile_context>

<pallas_src>
import jax
import jax.numpy as jnp
from jax.experimental import pallas as pl
from jax.experimental.pallas import tpu as pltpu


def _round_up(v, m):
    return ((v + m - 1) // m) * m


def _linear_kernel(x_ref, wt_ref, b_ref, y_ref):
    # x_ref : (TM, Din)   VMEM, one batch tile per grid step (double-buffered)
    # wt_ref: (Din, DP)   VMEM, pre-transposed + lane-padded weight, resident
    # b_ref : (1, Dout)   VMEM, resident
    # y_ref : (TM, Dout)  VMEM, un-padded output tile
    acc = jnp.dot(x_ref[...], wt_ref[...], preferred_element_type=jnp.float32)
    dout = y_ref.shape[-1]
    y_ref[...] = (acc[:, :dout] + b_ref[...]).astype(y_ref.dtype)


def prepare_params(weight, bias):
    """One-time (hoisted) parameter prep for the classifier head.

    Pads Dout up to a lane-dense multiple of 128 and pre-transposes the
    PyTorch-layout (Dout, Din) weight to (Din, DP) so the kernel runs a plain
    (M,K)x(K,N) MXU dot.  Call once at init / param load, NOT per forward.
    """
    dout, din = weight.shape
    dp = _round_up(max(dout, 1), 128)
    w_t = jnp.zeros((din, dp), weight.dtype).at[:, :dout].set(weight.T)
    return {"w_t": w_t, "b": bias.reshape(1, dout), "dout": dout}


def _pick_tm(batch, tm_max, min_steps):
    if batch <= 8:
        return batch  # one tile; full batch dim is a legal (sub-8) block
    # at least `min_steps` grid steps (keeps both v7x TensorCores busy),
    # tiles a multiple of 8 sublanes, never above tm_max
    target = _round_up(pl.cdiv(batch, min_steps), 8)
    tm = min(tm_max, target, _round_up(batch, 8))
    return max(8, (tm // 8) * 8)


def return_feature_layer_forward(x, params, *, tm=512, min_steps=2):
    """Pallas equivalent of ReturnFeatureLayer(nn.Linear(...)).forward(x).

    Args:
      x:      (B, Din) activations.
      params: output of prepare_params(weight, bias) (prepared once, reused).
      tm:     max batch-tile size; min_steps: target minimum grid steps.
    Returns:
      (y, x) with y = x @ weight.T + bias — exactly (self.mod(x), x).
    """
    w_t, b2, dout = params["w_t"], params["b"], params["dout"]
    batch, din = x.shape
    din_w, dp = w_t.shape
    assert din_w == din, "weight inner dim must match x features"
    itemsize = jnp.dtype(x.dtype).itemsize

    tm_eff = _pick_tm(batch, max(8, tm), min_steps)

    # VMEM budget: 2x double-buffered x tiles + resident (single-buffered)
    # weight/bias + 2x output tiles.  Shrink tm if it would overflow ~40 MiB
    # (safe under v7x's 64 MiB physical VMEM), then set the scoped limit so
    # v5e's 16 MiB default does not reject the tile size we picked.
    def vmem_bytes(t):
        return (2 * t * din + din * dp + dout + 2 * t * dout) * itemsize

    budget = 40 << 20
    while vmem_bytes(tm_eff) > budget and tm_eff > 8:
        tm_eff = max(8, ((tm_eff // 2) // 8) * 8)
    vmem_limit = int(min(max(vmem_bytes(tm_eff) + (4 << 20), 16 << 20), 48 << 20))

    grid = (pl.cdiv(batch, tm_eff),)

    y = pl.pallas_call(
        _linear_kernel,
        out_shape=jax.ShapeDtypeStruct((batch, dout), x.dtype),
        grid_spec=pl.GridSpec(
            grid=grid,
            in_specs=[
                # x: one batch tile per grid step (Pallas double-buffers it)
                pl.BlockSpec((tm_eff, din), lambda i: (i, 0)),
                # weight / bias: constant block -> VMEM-resident, single-buffered
                pl.BlockSpec((din, dp), lambda i: (0, 0),
                             pipeline_mode=pl.Buffered(1)),
                pl.BlockSpec((1, dout), lambda i: (0, 0),
                             pipeline_mode=pl.Buffered(1)),
            ],
            out_specs=pl.BlockSpec((tm_eff, dout), lambda i: (i, 0)),
        ),
        compiler_params=pltpu.CompilerParams(
            # independent batch tiles -> shard across TensorCores (v7x megacore)
            dimension_semantics=("parallel",),
            vmem_limit_bytes=vmem_limit),
        cost_estimate=pl.CostEstimate(
            flops=2 * batch * dp * din,
            transcendentals=0,
            bytes_accessed=(batch * din + din * dp + batch * dout) * itemsize),
    )(x, w_t, b2)

    # ReturnFeatureLayer semantics: return (self.mod(x), x); x untouched, no copy.
    return y, x


if __name__ == "__main__":
    key = jax.random.PRNGKey(0)
    k_x, k_w, k_b = jax.random.split(key, 3)

    # Small classifier-head shapes; B=16 with min_steps=2 gives a 2-step
    # pipelined, TC-sharded grid.
    B, Din, Dout = 16, 32, 10

    x = jax.random.normal(k_x, (B, Din), dtype=jnp.float32)
    weight = jax.random.normal(k_w, (Dout, Din), dtype=jnp.float32) * 0.1
    bias = jax.random.normal(k_b, (Dout,), dtype=jnp.float32) * 0.1

    params = prepare_params(weight, bias)          # hoisted, once per model
    y, x_out = return_feature_layer_forward(x, params)
    jax.block_until_ready((y, x_out))

    # correctness check against plain-JAX reference
    y_ref = x @ weight.T + bias
    assert y.shape == (B, Dout)
    assert jnp.allclose(y, y_ref, atol=1e-5, rtol=1e-5)
    assert bool((x_out == x).all())

    print("KERNEL_OK")
</pallas_src>

<mosaic_0001>
module attributes {stable_mosaic.version = 11 : i64} {
  func.func @_linear_kernel(%arg0: i32, %arg1: memref<8x32xf32, #tpu.memory_space<vmem>>, %arg2: memref<32x128xf32, #tpu.memory_space<vmem>>, %arg3: memref<1x10xf32, #tpu.memory_space<vmem>>, %arg4: memref<8x10xf32, #tpu.memory_space<vmem>>) attributes {dimension_semantics = [#tpu.dimension_semantics<parallel>], iteration_bounds = array<i64: 2>, scalar_prefetch = 0 : i64, scratch_operands = 0 : i64, tpu.core_type = #tpu.core_type<tc>, window_params = [{transform_indices = @transform_0, window_bounds = array<i64: 8, 32>}, {pipeline_mode = #tpu.pipeline_mode<synchronous>, transform_indices = @transform_1, window_bounds = array<i64: 32, 128>}, {pipeline_mode = #tpu.pipeline_mode<synchronous>, transform_indices = @transform_2, window_bounds = array<i64: 1, 10>}, {transform_indices = @transform_3, window_bounds = array<i64: 8, 10>}]} {
    %c0 = arith.constant 0 : index
    %c0_0 = arith.constant 0 : index
    %0 = vector.load %arg1[%c0, %c0_0] : memref<8x32xf32, #tpu.memory_space<vmem>>, vector<8x32xf32>
    %c0_1 = arith.constant 0 : index
    %c0_2 = arith.constant 0 : index
    %1 = vector.load %arg2[%c0_1, %c0_2] : memref<32x128xf32, #tpu.memory_space<vmem>>, vector<32x128xf32>
    %cst = arith.constant dense<0.000000e+00> : vector<8x128xf32>
    %2 = tpu.matmul %0, %1, %cst {dimension_numbers = #tpu.dot_dimension_numbers<[1], [0], [0], [1], [0, 0, 1, 1], [], []>} : vector<8x32xf32>, vector<32x128xf32>, vector<8x128xf32> -> vector<8x128xf32>
    %3 = vector.extract_strided_slice %2 {offsets = [0, 0], sizes = [8, 10], strides = [1, 1]} : vector<8x128xf32> to vector<8x10xf32>
    %c0_3 = arith.constant 0 : index
    %c0_4 = arith.constant 0 : index
    %4 = vector.load %arg3[%c0_3, %c0_4] : memref<1x10xf32, #tpu.memory_space<vmem>>, vector<1x10xf32>
    %5 = vector.broadcast %4 : vector<1x10xf32> to vector<8x10xf32>
    %6 = arith.addf %3, %5 : vector<8x10xf32>
    %c0_5 = arith.constant 0 : index
    %c0_6 = arith.constant 0 : index
    %7 = vector.load %arg4[%c0_5, %c0_6] : memref<8x10xf32, #tpu.memory_space<vmem>>, vector<8x10xf32>
    tpu.vector_store %arg4[%c0_5, %c0_6], %6 {strides = array<i32>} : memref<8x10xf32, #tpu.memory_space<vmem>>, vector<8x10xf32>,
    return
  }
  func.func @transform_0(%arg0: i32) -> (i32, i32) {
    %c0_i32 = arith.constant 0 : i32
    %c0_i32_0 = arith.constant 0 : i32
    return %arg0, %c0_i32 : i32, i32
  }
  func.func @transform_1(%arg0: i32) -> (i32, i32) {
    %c0_i32 = arith.constant 0 : i32
    %c0_i32_0 = arith.constant 0 : i32
    %c0_i32_1 = arith.constant 0 : i32
    return %c0_i32, %c0_i32_0 : i32, i32
  }
  func.func @transform_2(%arg0: i32) -> (i32, i32) {
    %c0_i32 = arith.constant 0 : i32
    %c0_i32_0 = arith.constant 0 : i32
    %c0_i32_1 = arith.constant 0 : i32
    return %c0_i32, %c0_i32_0 : i32, i32
  }
  func.func @transform_3(%arg0: i32) -> (i32, i32) {
    %c0_i32 = arith.constant 0 : i32
    %c0_i32_0 = arith.constant 0 : i32
    return %arg0, %c0_i32 : i32, i32
  }
}

</mosaic_0001>

<bundles_post_ra>
// kernel: tpu_custom_call.1
= control target key start
LH: loop header
LB: loop body
LE: loop exit
PB: predicated region body
PF: predicated region fallthrough
CT: control target
= control target key end

     0   :  { %8 = vsyncpa [#allocation3], 0  ;;  %s841_s0 = inlined_call_operand.hbm [shape: f32[16,32], index: 0, kind: input, shape index: {}]   ;;  %s842_s1 = inlined_call_operand.hbm [shape: f32[32,128], index: 1, kind: input, shape index: {}]   ;;  %s843_s2 = inlined_call_operand.vmem [shape: f32[1,10], index: 2, kind: input, shape index: {}]   ;;  %s844_s3 = inlined_call_operand.hbm [shape: f32[16,10], index: 3, kind: output, shape index: {}]  }
   0x1   :  { %10 = vsyncpa [#allocation3 + $0x1], 0 }
   0x2   :  { %11 = vsyncpa [#allocation6], 0 }
   0x3   :  { %12 = vsyncpa [#allocation4], 0 }
   0x4   :  { %14 = vsyncpa [#allocation4 + $0x1], 0  ;;  %s642_s12 = smov 0   ;;  %s644_s13 = smov 0  }
   0x5   :  { %s646_s14 = smov 0   ;;  %s648_s15 = smov 0  }
   0x6 LB: > { %s663_s16 = sadd.s32 4294967295, %s612_s15   ;;  %s384_s17 = sadd.s32 4294967294, %s612_s15   ;;  %s612_s15 = sphi %s648_s15, %s864_s15   ;;  %s608_s14 = sphi %s646_s14, %s863_s14   ;;  %s604_s13 = sphi %s644_s13, %s862_s13   ;;  %s600_s12 = sphi %s642_s12, %s861_s12  }
   0x7   : > { %p40_p0 = scmp.ne.s32.totalorder %s604_s13, %s600_s12  ;;  %p845_p1 = scmp.eq.s32.totalorder %s663_s16, 0 }
   0x8   : > { %p112_p3 = scmp.eq.s32.totalorder %s384_s17, 1  ;;  %p385_p5 = scmp.ge.s32.totalorder %s612_s15, 1 }
   0x9   : > { %p672_p4 = por %p845_p1, %p40_p0  ;;  %p119_p7 = scmp.lt.s32.totalorder %s612_s15, 3 }
   0xa   : > { %p677_p6 = por %p112_p3, %p40_p0  ;;  %s614_s21 = smov [#allocation5]  }
   0xb   : > { %s848_s18 = scalar_select %p672_p4, 1, 0 }
   0xc   : > { %s849_s19 = scalar_select %p677_p6, 1, 0 }
   0xd   : > { %p682_p8 = pnand %p385_p5, %p119_p7  ;;  %s131_s22 = sshll.u32 %s614_s21, 4  ;;  %s686_s22 = int_to_ptr.vmem [resolvable:$true] %s131_s22 }
   0xe   : > { %s698_s24 = sadd.s32 1, %s612_s15   ;;  %s27_s25 = sadd.s32 1, %s608_s14 }
   0xf   : > { %s850_s20 = scalar_select %p682_p8, 1, 0 }
  0x10   : > { %p430_p9 = pneg %p682_p8  ;;  %s24_s26 = ssub.s32 %s612_s15, %s698_s24 }
  0x11   : > { %s484_s29 = scalar_lea.hbm %s842_s1, 512 }
  0x12   : > { %p693_p11 = pnand %p430_p9, %p845_p1  ;;  %p485_p12 = scmp.ne.s32.totalorder %s842_s1, %s484_s29 }
  0x13   : > { %p491_p5 = scmp.lt.u32.totalorder %s484_s29, %s842_s1 }
  0x14   : > { %p486_p13 = pneg %p693_p11 }
  0x16   : > { %p487_p0 = pnand %p486_p13, %p485_p12 }
  0x18   : > { %p488_p3 = pneg %p487_p0 }
  0x1a   : > { %p493_p7 = pnand %p491_p5, %p488_p3 }
  0x1c   : > { %496 = shalt.err (!%p493_p7)
}
  0x1d   : > { %s497_s7 = scalar_lea.vmem %s686_s22, 512  ;;  %p505_p2 = scmp.lt.s32.totalorder %s686_s22, %s686_s22 }
  0x1e   : > { %p498_p9 = scmp.ne.s32.totalorder %s686_s22, %s497_s7  ;;  %p506_p6 = scmp.lt.s32.totalorder %s497_s7, %s497_s7 }
  0x20   : > { %p500_p10 = pnand %p498_p9, %p486_p13  ;;  %p507_p4 = por %p506_p6, %p505_p2 }
  0x22   : > { %p501_p1 = pneg %p500_p10 }
  0x24   : > { %p508_p8 = pnand %p507_p4, %p501_p1 }
  0x26   : > { %511 = shalt.err (!%p508_p8)
}
  0x27   : > { %s615_s8 = smov 128   ;;  %s616_s9 = smov 8  }
  0x28   : > { %433 = dma.hbm_to_vmem [thread:$0]  (!%p693_p11), %s842_s1, 512, %s686_s22, [#allocation6], %s615_s8, %s615_s8, %s616_s9  }
  0x29   : > { %p25_p2 = scmp.eq.s32.totalorder %s24_s26, 0  ;;  %p34_p1 = scmp.ne.s32.totalorder %s608_s14, %s604_s13 }
  0x2a   : > { %p35_p4 = scmp.eq.s32.totalorder %s612_s15, 0  ;;  %p443_p6 = scmp.lt.s32.totalorder %s612_s15, 2 }
  0x2b   : > { %s729_s17 = scalar_select %p25_p2, %s608_s14, %s27_s25  }
  0x2c   : > { %p36_p8 = por %p35_p4, %p34_p1  ;;  %p852_p10 = scmp.eq.s32.totalorder %s663_s16, 1 }
  0x2d   : > { %s148_s27 = sand.u32 1, %s608_s14   ;;  %s389_s28 = sshll.u32 %s612_s15, 7 }
  0x2e   : > { %p733_p12 = por %p852_p10, %p34_p1  ;;  %s388_s29 = sshll.u32 %s148_s27, 3 }
  0x2f   : > { %s742_s4 = scalar_lea.hbm %s841_s0, %s389_s28  ;;  %s152_s22 = scalar_lea.vmem [#allocation2], %s388_s29 }
  0x30   : > { %s159_s25 = sshll.u32 %s152_s22, 4  ;;  %p744_p11 = pnand %p443_p6, %p36_p8  ;;  %s748_s25 = int_to_ptr.vmem [resolvable:$true] %s159_s25 }
  0x31   : > { %s149_s5 = scalar_lea.sflag [#allocation3], %s148_s27  ;;  %s512_s6 = scalar_lea.hbm %s742_s4, 128 }
  0x32   : > { %p513_p13 = scmp.ne.s32.totalorder %s742_s4, %s512_s6  ;;  %p514_p0 = pneg %p744_p11 }
  0x33   : > { %s517_s9 = scalar_lea.hbm %s841_s0, 256  ;;  %p518_p7 = scmp.lt.u32.totalorder %s742_s4, %s841_s0 }
  0x34   : > { %p515_p3 = pnand %p514_p0, %p513_p13  ;;  %p519_p9 = scmp.lt.u32.totalorder %s517_s9, %s512_s6 }
  0x35   : > { %p521_p1 = scmp.lt.u32.totalorder %s512_s6, %s742_s4 }
  0x36   : > { %p516_p5 = pneg %p515_p3  ;;  %p520_p2 = por %p519_p9, %p518_p7 }
  0x38   : > { %p522_p4 = por %p521_p1, %p520_p2 }
  0x3a   : > { %p523_p6 = pnand %p522_p4, %p516_p5 }
  0x3c   : > { %526 = shalt.err (!%p523_p6)
}
  0x3d   : > { %s527_s27 = scalar_lea.vmem %s748_s25, 128  ;;  %s617_s28 = smov [#allocation2]  }
  0x3e   : > { %p528_p8 = scmp.ne.s32.totalorder %s748_s25, %s527_s27  ;;  %s532_s29 = sshll.u32 %s617_s28, 4  ;;  %s533_s29 = int_to_ptr.vmem [resolvable:$false] %s532_s29 }
  0x3f   : > { %s534_s23 = scalar_lea.vmem %s533_s29, 256  ;;  %p535_p3 = scmp.lt.s32.totalorder %s748_s25, %s533_s29 }
  0x40   : > { %p530_p10 = pnand %p528_p8, %p514_p0  ;;  %p536_p7 = scmp.lt.s32.totalorder %s534_s23, %s527_s27 }
  0x42   : > { %p531_p13 = pneg %p530_p10  ;;  %p537_p9 = por %p536_p7, %p535_p3 }
  0x44   : > { %p538_p2 = pnand %p537_p9, %p531_p13 }
  0x46   : > { %541 = shalt.err (!%p538_p2)
}
  0x47   : > { %437 = dma.hbm_to_vmem [thread:$0]  (!%p744_p11), %s742_s4, 128, %s748_s25, %s149_s5  }
  0x48   : > { %p855_p5 = scmp.ne.s32.totalorder %s850_s20, 0 }
  0x49   : > { %s778_s30 = sand.u32 (!%p855_p5), 1, %s604_s13   ;;  %p856_p0 = scmp.ne.s32.totalorder (!%p855_p5), %s848_s18, 0 }
  0x4a   : > { %168 = sbr.rel (%p855_p5) target bundleno = 323 (0x143), region = 32  ;;  %s391_s22 = sshll.u32 (!%p855_p5), %s778_s30, 3 }
  0x4b   : > { %s171_s6 = scalar_lea.sflag (!%p855_p5), [#allocation3], %s778_s30  ;;  %s174_s7 = scalar_lea.vmem (!%p855_p5), [#allocation2], %s391_s22 }
  0x51   : > { %587 = dma.done.wait (%p856_p0), %s171_s6, 128  }
  0x52   : > { %589 = vsyncadd (%p856_p0), %s171_s6, 4294967168  ;;  %p857_p1 = scmp.eq.s32.totalorder %s663_s16, 0 }
  0x54   : > { %591 = dma.done.wait (%p857_p1), [#allocation6], 512   ;;  %p858_p11 = pmov %p857_p1 }
  0x55   : > { %v618_v0 = vmov 0.0|0.0   ;;  %vm619_vm0 = vmmov 0   ;;  %v620_v1 = vmov 0.0   ;;  %v202_v2 = vld [vmem:[#allocation5] sm:$0xff]  ;;  %v203_v3 = vld [vmem:[#allocation5 + $0x8] sm:$0xff]  ;;  %v204_v4 = vld [vmem:[#allocation5 + $0x10] sm:$0xff] }
  0x56   : > { %593 = vsyncadd (%p858_p11), [#allocation6], 4294966784  ;;  %416 = vmatprep.subr.bf16.mxu0 %v618_v0  ;;  %413 = vmatprep.mubr.msk.f32.mxu0 %vm619_vm0, %v620_v1  ;;  %v417_v5 = vpack.c.bf16 %v203_v3, %v202_v2  ;;  %v205_v6 = vld [vmem:[#allocation5 + $0x18] sm:$0xff]  ;;  %vm206_vm1 = vcmask 261120   ;;  %v395_v9 = vld [vmem:[%s843_s2] ss:$0 sm:$0xff] }
  0x57   : > { %v420_v7 = vpack.c.bf16 %v205_v6, %v204_v4  ;;  %v201_v8 = vld [vmem:[%s174_s7] sm:$0xff]  ;;  %s397_s4 = sshll.u32 %s663_s16, 7  ;;  %s200_s25 = scalar_lea.vmem [#allocation7], %s391_s22  ;;  %vm288_vm2 = vcmask 80896  }
  0x58   : > { %418 = vmatpush3.bf16.msra.mxu0 %v417_v5  ;;  %s304_s26 = sshll.u32 %s200_s25, 4  ;;  %s797_s9 = scalar_lea.hbm %s844_s3, %s397_s4  ;;  %s799_s26 = int_to_ptr.vmem [resolvable:$true] %s304_s26 }
  0x59   : > { %419 = vmatprep.subr.bf16.mxu0 %v618_v0  ;;  %s291_s10 = scalar_lea.sflag [#allocation4], %s778_s30  ;;  %s542_s11 = scalar_lea.vmem %s799_s26, 128 }
  0x5a   : > { %p543_p4 = scmp.ne.s32.totalorder %s799_s26, %s542_s11  ;;  %s621_s16 = smov [#allocation7]  }
  0x5b   : > { %s546_s27 = sshll.u32 %s621_s16, 4  ;;  %s547_s27 = int_to_ptr.vmem [resolvable:$false] %s546_s27 }
  0x5c   : > { %421 = vmatpush3.bf16.msra.mxu0 %v420_v7  ;;  %p544_p6 = pnand %p543_p4, %p733_p12  ;;  %s548_s28 = scalar_lea.vmem %s547_s27, 256 }
  0x5d   : > { %p549_p10 = scmp.lt.s32.totalorder %s799_s26, %s547_s27  ;;  %p550_p13 = scmp.lt.s32.totalorder %s548_s28, %s542_s11 }
  0x5e   : > { %p545_p8 = pneg %p544_p6 }
  0x5f   : > { %414 = vmatmul.mubr.msk.f32.vlgmr.msra.gmra.mrb[0].mxu0 %vm206_vm1, %v201_v8  ;;  %p551_p3 = por %p550_p13, %p549_p10 }
  0x61   : > { %p552_p7 = pnand %p551_p3, %p545_p8 }
 0x132   : > { %v276_v10 = vpop.f32.mrb[0].mxu0 }
 0x133   : > { %v287_v11 = vadd.f32 %v395_v9, %v276_v10  ;;  %v415_v12 = vpop.f32.mrb[1].mxu0 }
 0x135   : > { %289 = vst.msk [vmem:[%s200_s25] sm:$0xff] %vm288_vm2, %v287_v11 }
 0x136   : > { %555 = shalt.err (!%p552_p7)
}
 0x137   : > { %s556_s29 = scalar_lea.hbm %s797_s9, 128  ;;  %s560_s22 = scalar_lea.hbm %s844_s3, 256 }
 0x138   : > { %p557_p9 = scmp.ne.s32.totalorder %s797_s9, %s556_s29  ;;  %p561_p0 = scmp.lt.u32.totalorder %s797_s9, %s844_s3 }
 0x139   : > { %p562_p1 = scmp.lt.u32.totalorder %s560_s22, %s556_s29  ;;  %p564_p4 = scmp.lt.u32.totalorder %s556_s29, %s797_s9 }
 0x13a   : > { %p558_p2 = pnand %p557_p9, %p733_p12 }
 0x13b   : > { %p563_p11 = por %p562_p1, %p561_p0 }
 0x13c   : > { %p559_p5 = pneg %p558_p2 }
 0x13d   : > { %p565_p6 = por %p564_p4, %p563_p11 }
 0x13f   : > { %p566_p8 = pnand %p565_p6, %p559_p5 }
 0x141   : > { %569 = shalt.err (!%p566_p8)
}
 0x142   : > { %428 = dma.vmem_to_hbm [thread:$0]  (%p733_p12), %s799_s26, 128, %s797_s9, %s291_s10  }
 0x143 PF: > { %s316_s18 = sand.u32 1, %s600_s12   ;;  %p859_p10 = scmp.ne.s32.totalorder %s849_s19, 0 }
 0x144   : > { %p860_p13 = scmp.ge.s32.totalorder %s612_s15, 2  ;;  %s317_s20 = scalar_lea.sflag [#allocation4], %s316_s18 }
 0x146   : > { %p439_p3 = pnand %p860_p13, %p859_p10 }
 0x148   : > { %595 = dma.done.wait (!%p439_p3), %s317_s20, 128  }
 0x149   : > { %597 = vsyncadd (!%p439_p3), %s317_s20, 4294967168  ;;  %p17_p7 = scmp.ge.s32.totalorder %s698_s24, 4   ;;  %s861_s12 = smov %s604_s13 }
 0x14a   : > { %s862_s13 = smov %s608_s14  ;;  %s863_s14 = smov %s729_s17 }
 0x14b   : > { %s864_s15 = smov %s698_s24  ;;  %19 = sbr.rel (!%p17_p7) target bundleno = 6 (0x6), region = 81 }
 0x152   :  { %322 = vsyncpa [#allocation3], 1 }
 0x153   :  { %324 = vsyncpa [#allocation3 + $0x1], 1 }
 0x154   :  { %325 = vsyncpa [#allocation6], 1 }
 0x155   :  { %326 = vsyncpa [#allocation4], 1 }
 0x156   :  { %328 = vsyncpa [#allocation4 + $0x1], 1 }

</bundles_post_ra>
